<compile_context>
chip_gen: v7x
topology: tpu7x:2x2x1
jax: 0.10.0
libtpu: 0.0.40
codegen_flags: <defaults>
</compile_context>

<pallas_src>
import functools

import jax
import jax.numpy as jnp
from jax.experimental import pallas as pl
from jax.experimental.pallas import tpu as pltpu


# ----------------------------- VMEM budgeting ------------------------------

@functools.lru_cache(maxsize=None)
def _vmem_budget_bytes():
    """~75% of physical VMEM, generation-aware (48 MiB v7x, 96 MiB v5e/v6e)."""
    cap = 64 * 1024 * 1024                      # conservative default (v7x)
    try:
        info = pltpu.get_tpu_info()
        c = int(getattr(info, "vmem_capacity_bytes", 0))
        if c > 0:
            cap = c
    except Exception:
        pass
    return (cap // 4) * 3


# ----------------------------- tiling helpers ------------------------------

def _pick_div_tile(n, multiple, cap):
    """Largest t <= cap with t % multiple == 0 and n % t == 0; else full n."""
    if n <= cap:
        return n
    if n % multiple != 0:
        return n                                # full-extent block (legal)
    t = (min(cap, n) // multiple) * multiple
    while t >= multiple:
        if n % t == 0:
            return t
        t -= multiple
    return n


def _plan_tiles(R, S, streams, budget):
    """Pick (tr, ts): spatial (lane) axis first -> contiguous DMA slabs, then
    rows to fill the double-buffer budget; keep >= 4 row blocks when possible
    so both TCs get balanced work on v7x."""
    per_elem = streams * 2 * 4                  # double-buffered f32 streams
    ts_cap = max(128, budget // (per_elem * 8))
    ts = _pick_div_tile(S, 128, ts_cap)
    tr_cap = max(8, budget // (per_elem * ts))
    if R >= 32:
        tr_cap = min(tr_cap, max(8, R // 4))
    tr = _pick_div_tile(R, 8, tr_cap)
    # TODO(synk): for awkward shapes (S not a multiple of 128 and larger than
    # the budget) this falls back to a full-extent block; pad S or mask the
    # last tile if such shapes ever show up.
    return tr, ts


# ----------------------------- Pallas kernels ------------------------------

def _calayer_fused_kernel(x_ref, w1_ref, b1_ref, w2t_ref, b2_ref, o_ref, *,
                          inv_s, neg_slope):
    """Whole CALayer on one resident per-batch slab.

    x_ref  : [1, C, S]   per-batch activation slab (S = H*W, lane-dense)
    w1_ref : [C, M]      first 1x1 conv weight
    b1_ref : [1, M]
    w2t_ref: [C, M]      second 1x1 conv weight, transposed
    b2_ref : [C, 1]
    """
    x = x_ref[0]                                           # [C, S]
    # Global average pool (per-channel mean over spatial axis).
    y = jnp.sum(x, axis=-1, keepdims=True) * inv_s         # [C, 1]
    # SE gate via broadcast-mul + reduce (tiny; stays on the VPU).
    h = jnp.sum(w1_ref[...] * y, axis=0, keepdims=True) + b1_ref[...]    # [1, M]
    h = jnp.where(h >= 0.0, h, h * neg_slope)                            # LeakyReLU
    g = jnp.sum(w2t_ref[...] * h, axis=-1, keepdims=True) + b2_ref[...]  # [C, 1]
    g = jax.nn.sigmoid(g)
    # Scale the resident slab and write out (no second read of x from HBM).
    o_ref[0] = x * g


def _gap_kernel(x_ref, o_ref, acc_ref, *, inv_s):
    # Row-wise mean of a [R, S] slab; reduction axis (grid axis 1) pipelined.
    j = pl.program_id(1)

    @pl.when(j == 0)
    def _():
        acc_ref[...] = jnp.zeros_like(acc_ref)

    acc_ref[...] += jnp.sum(x_ref[...], axis=-1, keepdims=True)

    @pl.when(j == pl.num_programs(1) - 1)
    def _():
        o_ref[...] = acc_ref[...] * inv_s


def _scale_kernel(x_ref, s_ref, o_ref):
    # out = x * per-row gate (broadcast along the lane-dense spatial axis)
    o_ref[...] = x_ref[...] * s_ref[...]


# ------------------------------ Pallas wrappers -----------------------------

def _calayer_fused(x, params, neg_slope):
    B, C, H, W = x.shape
    S = H * W
    M = params["w1"].shape[1]
    x3 = x.reshape(B, C, S)                       # free, lane-dense view
    w1 = params["w1"]                             # [C, M]
    b1 = params["b1"].reshape(1, M)
    w2t = params["w2"].T                          # [C, M]
    b2 = params["b2"].reshape(C, 1)

    out = pl.pallas_call(
        functools.partial(_calayer_fused_kernel,
                          inv_s=1.0 / float(S), neg_slope=neg_slope),
        out_shape=jax.ShapeDtypeStruct((B, C, S), jnp.float32),
        grid=(B,),
        in_specs=[pl.BlockSpec((1, C, S), lambda b: (b, 0, 0)),
                  pl.BlockSpec((C, M), lambda b: (0, 0)),
                  pl.BlockSpec((1, M), lambda b: (0, 0)),
                  pl.BlockSpec((C, M), lambda b: (0, 0)),
                  pl.BlockSpec((C, 1), lambda b: (0, 0))],
        out_specs=pl.BlockSpec((1, C, S), lambda b: (b, 0, 0)),
        compiler_params=pltpu.CompilerParams(
            dimension_semantics=("parallel",),
            vmem_limit_bytes=_vmem_budget_bytes()),
        cost_estimate=pl.CostEstimate(
            flops=int(2 * B * C * S + 4 * B * C * M),
            transcendentals=int(B * (C + M)),
            bytes_accessed=int(2 * B * C * S * 4 + 2 * C * M * 4 + C * 8)),
        # input_output_aliases={0: 0} could reuse x's HBM buffer when the
        # caller donates x; left off so non-donated inputs are not copied.
    )(x3, w1, b1, w2t, b2)
    return out.reshape(B, C, H, W)


def _global_avg_pool(x2d):
    """x2d: [R, S] float32 -> [R, 1] row means (tiled fallback path)."""
    R, S = x2d.shape
    budget = max(1 << 20, _vmem_budget_bytes() - (4 << 20))
    tr, ts = _plan_tiles(R, S, streams=1, budget=budget)
    grid = (R // tr, S // ts)
    return pl.pallas_call(
        functools.partial(_gap_kernel, inv_s=1.0 / float(S)),
        out_shape=jax.ShapeDtypeStruct((R, 1), jnp.float32),
        grid=grid,
        in_specs=[pl.BlockSpec((tr, ts), lambda i, j: (i, j))],
        out_specs=pl.BlockSpec((tr, 1), lambda i, j: (i, 0)),
        scratch_shapes=[pltpu.VMEM((tr, 1), jnp.float32)],
        compiler_params=pltpu.CompilerParams(
            dimension_semantics=("parallel", "arbitrary"),
            vmem_limit_bytes=_vmem_budget_bytes()),
        cost_estimate=pl.CostEstimate(
            flops=int(R) * int(S), transcendentals=0,
            bytes_accessed=int(R) * int(S) * 4 + int(R) * 4),
    )(x2d)


def _scale_rows(x2d, scale):
    """x2d: [R, S], scale: [R, 1] -> x2d * scale (tiled fallback path)."""
    R, S = x2d.shape
    budget = max(1 << 20, _vmem_budget_bytes() - (4 << 20))
    tr, ts = _plan_tiles(R, S, streams=2, budget=budget)
    grid = (R // tr, S // ts)
    return pl.pallas_call(
        _scale_kernel,
        out_shape=jax.ShapeDtypeStruct((R, S), jnp.float32),
        grid=grid,
        in_specs=[pl.BlockSpec((tr, ts), lambda i, j: (i, j)),
                  pl.BlockSpec((tr, 1), lambda i, j: (i, 0))],
        out_specs=pl.BlockSpec((tr, ts), lambda i, j: (i, j)),
        compiler_params=pltpu.CompilerParams(
            dimension_semantics=("parallel", "parallel"),
            vmem_limit_bytes=_vmem_budget_bytes()),
        cost_estimate=pl.CostEstimate(
            flops=int(R) * int(S), transcendentals=0,
            bytes_accessed=2 * int(R) * int(S) * 4 + int(R) * 4),
    )(x2d, scale)


def _se_gate_xla(y, w1, b1, w2, b2, neg_slope):
    """Tiny SE gate in plain XLA (fallback path): [B,C] -> [B,C]."""
    h = y @ w1 + b1
    h = jnp.where(h >= 0.0, h, neg_slope * h)
    return jax.nn.sigmoid(h @ w2 + b2)


# ------------------------------- CALayer model -------------------------------

def init_calayer(key, channel, reduction=16):
    mid = channel // reduction
    k1, k2, k3, k4 = jax.random.split(key, 4)
    # w1/w2 are the 1x1 conv kernels, stored as [Cin, Cout] matmul weights.
    return {
        "w1": 0.2 * jax.random.normal(k1, (channel, mid), jnp.float32),
        "b1": 0.1 * jax.random.normal(k2, (mid,), jnp.float32),
        "w2": 0.2 * jax.random.normal(k3, (mid, channel), jnp.float32),
        "b2": 0.1 * jax.random.normal(k4, (channel,), jnp.float32),
    }


def calayer_forward(x, params, *, neg_slope=0.2, force_unfused=False):
    """CALayer.forward(x).  x: [B, C, H, W] float32."""
    B, C, H, W = x.shape
    S = H * W
    slab_bytes = C * S * 4
    # Fused kernel needs double-buffered input + output slabs (+ tiny weights).
    fused_need = 4 * slab_bytes + (2 << 20)
    if (not force_unfused) and fused_need <= _vmem_budget_bytes():
        return _calayer_fused(x, params, neg_slope)

    # Fallback: tiled GAP + tiled scale; the microscopic SE gate stays in XLA.
    R = B * C
    x2d = x.reshape(R, S)                                    # lane-dense view
    y = _global_avg_pool(x2d).reshape(B, C)                  # AdaptiveAvgPool2d(1)
    gate = _se_gate_xla(y, params["w1"], params["b1"],
                        params["w2"], params["b2"], neg_slope)
    out2d = _scale_rows(x2d, gate.reshape(R, 1))             # x * y2 (broadcast)
    return out2d.reshape(B, C, H, W)


# --------------------------- pure-JAX reference ------------------------------

def calayer_ref(x, params, neg_slope=0.2):
    y = jnp.mean(x, axis=(2, 3))                             # [B, C]
    h = y @ params["w1"] + params["b1"]
    h = jnp.where(h >= 0.0, h, neg_slope * h)
    g = jax.nn.sigmoid(h @ params["w2"] + params["b2"])
    return x * g[:, :, None, None]


# ----------------------------------- main ------------------------------------

if __name__ == "__main__":
    key = jax.random.PRNGKey(0)
    kx, kp = jax.random.split(key)

    B, C, H, W = 2, 64, 16, 16
    reduction = 16
    x = jax.random.normal(kx, (B, C, H, W), jnp.float32)
    params = init_calayer(kp, C, reduction)

    ref = jax.block_until_ready(calayer_ref(x, params))

    # Primary (fully fused) path.
    out = jax.block_until_ready(calayer_forward(x, params))
    assert out.shape == (B, C, H, W), out.shape
    assert jnp.allclose(out, ref, atol=1e-4, rtol=1e-4), \
        float(jnp.max(jnp.abs(out - ref)))

    # Also exercise the tiled fallback path (used when a per-batch slab would
    # not fit in VMEM) to make sure both code paths stay correct.
    out_tiled = jax.block_until_ready(
        calayer_forward(x, params, force_unfused=True))
    assert jnp.allclose(out_tiled, ref, atol=1e-4, rtol=1e-4), \
        float(jnp.max(jnp.abs(out_tiled - ref)))

    print("KERNEL_OK")
</pallas_src>

<mosaic_0001>
module attributes {stable_mosaic.version = 11 : i64} {
  func.func @_calayer_fused_kernel(%arg0: i32, %arg1: memref<1x64x256xf32, #tpu.memory_space<vmem>>, %arg2: memref<64x4xf32, #tpu.memory_space<vmem>>, %arg3: memref<1x4xf32, #tpu.memory_space<vmem>>, %arg4: memref<64x4xf32, #tpu.memory_space<vmem>>, %arg5: memref<64x1xf32, #tpu.memory_space<vmem>>, %arg6: memref<1x64x256xf32, #tpu.memory_space<vmem>>) attributes {dimension_semantics = [#tpu.dimension_semantics<parallel>], iteration_bounds = array<i64: 2>, scalar_prefetch = 0 : i64, scratch_operands = 0 : i64, tpu.core_type = #tpu.core_type<tc>, window_params = [{transform_indices = @transform_0, window_bounds = array<i64: 1, 64, 256>}, {pipeline_mode = #tpu.pipeline_mode<synchronous>, transform_indices = @transform_1, window_bounds = array<i64: 64, 4>}, {pipeline_mode = #tpu.pipeline_mode<synchronous>, transform_indices = @transform_2, window_bounds = array<i64: 1, 4>}, {pipeline_mode = #tpu.pipeline_mode<synchronous>, transform_indices = @transform_3, window_bounds = array<i64: 64, 4>}, {pipeline_mode = #tpu.pipeline_mode<synchronous>, transform_indices = @transform_4, window_bounds = array<i64: 64, 1>}, {transform_indices = @transform_5, window_bounds = array<i64: 1, 64, 256>}]} {
    %c0 = arith.constant 0 : index
    %c0_0 = arith.constant 0 : index
    %c0_1 = arith.constant 0 : index
    %0 = vector.load %arg1[%c0, %c0_0, %c0_1] : memref<1x64x256xf32, #tpu.memory_space<vmem>>, vector<1x64x256xf32>
    %1 = vector.shape_cast %0 : vector<1x64x256xf32> to vector<64x256xf32>
    %cst = arith.constant dense<0.000000e+00> : vector<64xf32>
    %2 = vector.multi_reduction <add>, %1, %cst [1] : vector<64x256xf32> to vector<64xf32>
    %3 = vector.shape_cast %2 : vector<64xf32> to vector<64x1xf32>
    %cst_2 = arith.constant 3.906250e-03 : f32
    %4 = vector.broadcast %cst_2 : f32 to vector<64x1xf32>
    %5 = arith.mulf %3, %4 : vector<64x1xf32>
    %c0_3 = arith.constant 0 : index
    %c0_4 = arith.constant 0 : index
    %6 = vector.load %arg2[%c0_3, %c0_4] : memref<64x4xf32, #tpu.memory_space<vmem>>, vector<64x4xf32>
    %7 = vector.broadcast %5 : vector<64x1xf32> to vector<64x4xf32>
    %8 = arith.mulf %6, %7 : vector<64x4xf32>
    %cst_5 = arith.constant dense<0.000000e+00> : vector<4xf32>
    %9 = vector.multi_reduction <add>, %8, %cst_5 [0] : vector<64x4xf32> to vector<4xf32>
    %10 = vector.shape_cast %9 : vector<4xf32> to vector<1x4xf32>
    %c0_6 = arith.constant 0 : index
    %c0_7 = arith.constant 0 : index
    %11 = vector.load %arg3[%c0_6, %c0_7] : memref<1x4xf32, #tpu.memory_space<vmem>>, vector<1x4xf32>
    %12 = arith.addf %10, %11 : vector<1x4xf32>
    %cst_8 = arith.constant 0.000000e+00 : f32
    %13 = vector.broadcast %cst_8 : f32 to vector<1x4xf32>
    %14 = arith.cmpf oge, %12, %13 : vector<1x4xf32>
    %cst_9 = arith.constant 2.000000e-01 : f32
    %15 = vector.broadcast %cst_9 : f32 to vector<1x4xf32>
    %16 = arith.mulf %12, %15 : vector<1x4xf32>
    %17 = arith.select %14, %12, %16 : vector<1x4xi1>, vector<1x4xf32>
    %c0_10 = arith.constant 0 : index
    %c0_11 = arith.constant 0 : index
    %18 = vector.load %arg4[%c0_10, %c0_11] : memref<64x4xf32, #tpu.memory_space<vmem>>, vector<64x4xf32>
    %19 = vector.broadcast %17 : vector<1x4xf32> to vector<64x4xf32>
    %20 = arith.mulf %18, %19 : vector<64x4xf32>
    %cst_12 = arith.constant dense<0.000000e+00> : vector<64xf32>
    %21 = vector.multi_reduction <add>, %20, %cst_12 [1] : vector<64x4xf32> to vector<64xf32>
    %22 = vector.shape_cast %21 : vector<64xf32> to vector<64x1xf32>
    %c0_13 = arith.constant 0 : index
    %c0_14 = arith.constant 0 : index
    %23 = vector.load %arg5[%c0_13, %c0_14] : memref<64x1xf32, #tpu.memory_space<vmem>>, vector<64x1xf32>
    %24 = arith.addf %22, %23 : vector<64x1xf32>
    %25 = arith.negf %24 : vector<64x1xf32>
    %26 = math.exp %25 : vector<64x1xf32>
    %cst_15 = arith.constant 1.000000e+00 : f32
    %27 = vector.broadcast %cst_15 : f32 to vector<64x1xf32>
    %28 = arith.addf %27, %26 : vector<64x1xf32>
    %29 = arith.divf %27, %28 : vector<64x1xf32>
    %30 = vector.broadcast %29 : vector<64x1xf32> to vector<64x256xf32>
    %31 = arith.mulf %1, %30 : vector<64x256xf32>
    %c0_16 = arith.constant 0 : index
    %c0_17 = arith.constant 0 : index
    %c0_18 = arith.constant 0 : index
    %32 = vector.load %arg6[%c0_16, %c0_17, %c0_18] : memref<1x64x256xf32, #tpu.memory_space<vmem>>, vector<1x64x256xf32>
    %33 = vector.shape_cast %32 : vector<1x64x256xf32> to vector<64x256xf32>
    %34 = vector.shape_cast %31 : vector<64x256xf32> to vector<1x64x256xf32>
    tpu.vector_store %arg6[%c0_16, %c0_17, %c0_18], %34 {strides = array<i32>} : memref<1x64x256xf32, #tpu.memory_space<vmem>>, vector<1x64x256xf32>,
    return
  }
  func.func @transform_0(%arg0: i32) -> (i32, i32, i32) {
    %c0_i32 = arith.constant 0 : i32
    %c0_i32_0 = arith.constant 0 : i32
    %c0_i32_1 = arith.constant 0 : i32
    return %arg0, %c0_i32, %c0_i32_0 : i32, i32, i32
  }
  func.func @transform_1(%arg0: i32) -> (i32, i32) {
    %c0_i32 = arith.constant 0 : i32
    %c0_i32_0 = arith.constant 0 : i32
    %c0_i32_1 = arith.constant 0 : i32
    return %c0_i32, %c0_i32_0 : i32, i32
  }
  func.func @transform_2(%arg0: i32) -> (i32, i32) {
    %c0_i32 = arith.constant 0 : i32
    %c0_i32_0 = arith.constant 0 : i32
    %c0_i32_1 = arith.constant 0 : i32
    return %c0_i32, %c0_i32_0 : i32, i32
  }
  func.func @transform_3(%arg0: i32) -> (i32, i32) {
    %c0_i32 = arith.constant 0 : i32
    %c0_i32_0 = arith.constant 0 : i32
    %c0_i32_1 = arith.constant 0 : i32
    return %c0_i32, %c0_i32_0 : i32, i32
  }
  func.func @transform_4(%arg0: i32) -> (i32, i32) {
    %c0_i32 = arith.constant 0 : i32
    %c0_i32_0 = arith.constant 0 : i32
    %c0_i32_1 = arith.constant 0 : i32
    return %c0_i32, %c0_i32_0 : i32, i32
  }
  func.func @transform_5(%arg0: i32) -> (i32, i32, i32) {
    %c0_i32 = arith.constant 0 : i32
    %c0_i32_0 = arith.constant 0 : i32
    %c0_i32_1 = arith.constant 0 : i32
    return %arg0, %c0_i32, %c0_i32_0 : i32, i32, i32
  }
}

</mosaic_0001>

<bundles_post_ra>
// kernel: tpu_custom_call.1
= control target key start
LH: loop header
LB: loop body
LE: loop exit
PB: predicated region body
PF: predicated region fallthrough
CT: control target
= control target key end

     0   :  { %10 = vsyncpa [#allocation3], 0  ;;  %s1185_s0 = inlined_call_operand.hbm [shape: f32[2,64,256], index: 0, kind: input, shape index: {}]   ;;  %s1186_s1 = inlined_call_operand.vmem [shape: f32[64,4], index: 1, kind: input, shape index: {}]   ;;  %s1187_s2 = inlined_call_operand.vmem [shape: f32[1,4], index: 2, kind: input, shape index: {}]   ;;  %s1188_s3 = inlined_call_operand.vmem [shape: f32[64,4], index: 3, kind: input, shape index: {}]   ;;  %s1189_s4 = inlined_call_operand.vmem [shape: f32[64,1], index: 4, kind: input, shape index: {}]   ;;  %s1190_s5 = inlined_call_operand.hbm [shape: f32[2,64,256], index: 5, kind: output, shape index: {}]  }
   0x1   :  { %12 = vsyncpa [#allocation3 + $0x1], 0 }
   0x2   :  { %13 = vsyncpa [#allocation4], 0 }
   0x3   :  { %15 = vsyncpa [#allocation4 + $0x1], 0  ;;  %s845_s18 = smov 0   ;;  %s847_s19 = smov 0  }
   0x4   :  { %s849_s20 = smov 0   ;;  %s851_s21 = smov 0  }
   0x5 LB: > { %s866_s22 = sadd.s32 4294967295, %s806_s21   ;;  %s601_s23 = sadd.s32 4294967294, %s806_s21   ;;  %s806_s21 = sphi %s851_s21, %s1203_s21   ;;  %s802_s20 = sphi %s849_s20, %s1202_s20   ;;  %s798_s19 = sphi %s847_s19, %s1201_s19   ;;  %s794_s18 = sphi %s845_s18, %s1200_s18  }
   0x6   : > { %s870_s24 = sadd.s32 1, %s806_s21   ;;  %s28_s25 = sadd.s32 1, %s802_s20 }
   0x7   : > { %s25_s26 = ssub.s32 %s806_s21, %s870_s24  ;;  %p35_p0 = scmp.ne.s32.totalorder %s802_s20, %s798_s19 }
   0x8   : > { %p26_p1 = scmp.eq.s32.totalorder %s25_s26, 0  ;;  %p36_p2 = scmp.eq.s32.totalorder %s806_s21, 0 }
   0x9   : > { %p41_p3 = scmp.ne.s32.totalorder %s798_s19, %s794_s18  ;;  %p42_p4 = scmp.eq.s32.totalorder %s866_s22, 0 }
   0xa   : > { %s882_s27 = scalar_select %p26_p1, %s802_s20, %s28_s25  }
   0xb   : > { %p884_p5 = por %p36_p2, %p35_p0  ;;  %p888_p6 = por %p42_p4, %p41_p3 }
   0xc   : > { %p149_p7 = scmp.eq.s32.totalorder %s866_s22, 1  ;;  %p155_p8 = scmp.eq.s32.totalorder %s601_s23, 1 }
   0xd   : > { %p637_p10 = scmp.lt.s32.totalorder %s806_s21, 2  ;;  %s187_s7 = sand.u32 1, %s802_s20  }
   0xe   : > { %p895_p11 = por %p149_p7, %p35_p0  ;;  %p899_p12 = por %p155_p8, %p41_p3 }
   0xf   : > { %s623_s8 = sshll.u32 %s806_s21, 11  ;;  %s604_s9 = sshll.u32 %s187_s7, 7 }
  0x10   : > { %s1194_s30 = scalar_select %p895_p11, 1, 0 }
  0x11   : > { %s1195_s6 = scalar_select %p899_p12, 1, 0 }
  0x12   : > { %s908_s12 = scalar_lea.hbm %s1185_s0, %s623_s8  ;;  %s191_s13 = scalar_lea.vmem [#allocation2], %s604_s9 }
  0x13   : > { %s198_s14 = sshll.u32 %s191_s13, 4  ;;  %p912_p13 = pnand %p637_p10, %p884_p5  ;;  %s916_s14 = int_to_ptr.vmem [resolvable:$true] %s198_s14 }
  0x14   : > { %s918_s16 = scalar_lea.sflag [#allocation3], %s187_s7  ;;  %s710_s17 = scalar_lea.hbm %s908_s12, 2048 }
  0x15   : > { %p711_p0 = scmp.ne.s32.totalorder %s908_s12, %s710_s17  ;;  %p712_p1 = pneg %p912_p13 }
  0x16   : > { %s715_s26 = scalar_lea.hbm %s1185_s0, 4096  ;;  %p716_p4 = scmp.lt.u32.totalorder %s908_s12, %s1185_s0 }
  0x17   : > { %p713_p2 = pnand %p712_p1, %p711_p0  ;;  %p717_p5 = scmp.lt.u32.totalorder %s715_s26, %s710_s17 }
  0x18   : > { %p719_p8 = scmp.lt.u32.totalorder %s710_s17, %s908_s12 }
  0x19   : > { %p714_p3 = pneg %p713_p2  ;;  %p718_p7 = por %p717_p5, %p716_p4 }
  0x1b   : > { %p720_p10 = por %p719_p8, %p718_p7 }
  0x1d   : > { %p721_p9 = pnand %p720_p10, %p714_p3 }
  0x1f   : > { %724 = shalt.err (!%p721_p9)
}
  0x20   : > { %s725_s7 = scalar_lea.vmem %s916_s14, 2048  ;;  %s808_s9 = smov [#allocation2]  }
  0x21   : > { %p726_p0 = scmp.ne.s32.totalorder %s916_s14, %s725_s7  ;;  %s730_s10 = sshll.u32 %s808_s9, 4  ;;  %s731_s10 = int_to_ptr.vmem [resolvable:$false] %s730_s10 }
  0x22   : > { %s732_s11 = scalar_lea.vmem %s731_s10, 4096  ;;  %p733_p11 = scmp.lt.s32.totalorder %s916_s14, %s731_s10 }
  0x23   : > { %p728_p2 = pnand %p726_p0, %p712_p1  ;;  %p734_p4 = scmp.lt.s32.totalorder %s732_s11, %s725_s7 }
  0x25   : > { %p729_p12 = pneg %p728_p2  ;;  %p735_p5 = por %p734_p4, %p733_p11 }
  0x27   : > { %p736_p7 = pnand %p735_p5, %p729_p12 }
  0x29   : > { %739 = shalt.err (!%p736_p7)
}
  0x2a   : > { %s809_s13 = smov 256   ;;  %s810_s17 = smov 16  }
  0x2b   : > { %632 = dma.hbm_to_vmem [thread:$0]  (!%p912_p13), %s908_s12, 2048, %s916_s14, %s918_s16, %s809_s13, %s809_s13, %s810_s17  }
  0x2c   : > { %p607_p9 = scmp.ge.s32.totalorder %s806_s21, 1  ;;  %p206_p1 = scmp.lt.s32.totalorder %s806_s21, 3 }
  0x2e   : > { %p207_p3 = pnand %p607_p9, %p206_p1 }
  0x2f   : > { %s949_s23 = sand.u32 (!%p207_p3), 1, %s798_s19  }
  0x30   : > { %210 = sbr.rel (%p207_p3) target bundleno = 586 (0x24a), region = 40  ;;  %s608_s25 = sshll.u32 (!%p207_p3), %s949_s23, 7 }
  0x31   : > { %s213_s26 = scalar_lea.sflag (!%p207_p3), [#allocation3], %s949_s23  ;;  %s216_s28 = scalar_lea.vmem (!%p207_p3), [#allocation2], %s608_s25 }
  0x37   : > { %785 = dma.done.wait (%p888_p6), %s213_s26, 2048  }
  0x38   : > { %787 = vsyncadd (%p888_p6), %s213_s26, 4294965248  ;;  %v959_v0 = vld [vmem:[%s216_s28] sm:$0xff]  ;;  %v961_v1 = vld [vmem:[%s216_s28 + $0x8] sm:$0xff]  ;;  %vm307_vm0 = vcmask 31744   ;;  %s1104_s10 = scalar_lea.vmem [#allocation5], %s608_s25  ;;  %s624_s25 = sshll.u32 %s866_s22, 11 }
  0x39   : > { %v963_v2 = vld [vmem:[%s216_s28 + $0x20] sm:$0xff]  ;;  %v259_v3 = vadd.f32 %v961_v1, %v959_v0  ;;  %v967_v4 = vld [vmem:[%s216_s28 + $0x28] sm:$0xff]  ;;  %v969_v5 = vld [vmem:[%s216_s28 + $0x10] sm:$0xff]  ;;  %s528_s11 = sshll.u32 %s1104_s10, 4  ;;  %s1135_s26 = scalar_lea.hbm %s1190_s5, %s624_s25  ;;  %s1137_s11 = int_to_ptr.vmem [resolvable:$true] %s528_s11 }
  0x3a   : > { %v971_v6 = vld [vmem:[%s216_s28 + $0x18] sm:$0xff]  ;;  %v265_v7 = vadd.f32 %v967_v4, %v963_v2  ;;  %v975_v8 = vld [vmem:[%s216_s28 + $0x30] sm:$0xff]  ;;  %v983_v12 = vld [vmem:[%s216_s28 + $0x40] sm:$0xff]  ;;  %s515_s22 = scalar_lea.sflag [#allocation4], %s949_s23  ;;  %p1197_p11 = scmp.ne.s32.totalorder %s1194_s30, 0 }
  0x3b   : > { %v977_v9 = vld [vmem:[%s216_s28 + $0x38] sm:$0xff]  ;;  %260 = vadd.xlane.f32.xlu0 %v259_v3  ;;  %v262_v10 = vadd.f32 %v971_v6, %v969_v5  ;;  %v985_v13 = vld [vmem:[%s216_s28 + $0x48] sm:$0xff]  ;;  %v987_v14 = vld [vmem:[%s216_s28 + $0x50] sm:$0xff]  ;;  %s812_s29 = smov [#allocation5]  }
  0x3c   : > { %266 = vadd.xlane.f32.xlu1 %v265_v7  ;;  %v268_v11 = vadd.f32 %v977_v9, %v975_v8  ;;  %v989_v15 = vld [vmem:[%s216_s28 + $0x58] sm:$0xff]  ;;  %v271_v16 = vadd.f32 %v985_v13, %v983_v12  ;;  %v995_v18 = vld [vmem:[%s216_s28 + $0x60] sm:$0xff]  ;;  %v997_v19 = vld [vmem:[%s216_s28 + $0x68] sm:$0xff]  ;;  %s744_s12 = sshll.u32 %s812_s29, 4  ;;  %s745_s12 = int_to_ptr.vmem [resolvable:$false] %s744_s12 }
  0x3d   : > { %v274_v17 = vadd.f32 %v989_v15, %v987_v14  ;;  %v999_v20 = vld [vmem:[%s216_s28 + $0x70] sm:$0xff]  ;;  %v1001_v21 = vld [vmem:[%s216_s28 + $0x78] sm:$0xff]  ;;  %v277_v22 = vadd.f32 %v997_v19, %v995_v18  ;;  %v291_v27 = vld [vmem:[%s1186_s1] sm:$0xff]  ;;  %s740_s28 = scalar_lea.vmem %s1137_s11, 2048  ;;  %s746_s14 = scalar_lea.vmem %s745_s12, 4096 }
  0x3e   : > { %v280_v23 = vadd.f32 %v1001_v21, %v999_v20  ;;  %v293_v29 = vld [vmem:[%s1186_s1 + $0x10] sm:$0xff]  ;;  %v292_v30 = vld [vmem:[%s1186_s1 + $0x8] sm:$0xff]  ;;  %v294_v34 = vld [vmem:[%s1186_s1 + $0x18] sm:$0xff]  ;;  %p741_p6 = scmp.ne.s32.totalorder %s1137_s11, %s740_s28  ;;  %p747_p8 = scmp.lt.s32.totalorder %s1137_s11, %s745_s12 }
  0x3f   : > { %263 = vadd.xlane.f32.xlu0 %v262_v10  ;;  %v295_v40 = vld [vmem:[%s1186_s1 + $0x20] sm:$0xff]  ;;  %v296_v45 = vld [vmem:[%s1186_s1 + $0x28] sm:$0xff]  ;;  %v297_v54 = vld [vmem:[%s1186_s1 + $0x30] sm:$0xff]  ;;  %p748_p10 = scmp.lt.s32.totalorder %s746_s14, %s740_s28 }
  0x40   : > { %269 = vadd.xlane.f32.xlu1 %v268_v11  ;;  %v298_v58 = vld [vmem:[%s1186_s1 + $0x38] sm:$0xff]  ;;  %p742_p12 = pnand %p741_p6, %p1197_p11 }
  0x41   : > { %p749_p0 = por %p748_p10, %p747_p8 }
  0x42   : > { %p743_p13 = pneg %p742_p12 }
  0x43   : > { %272 = vadd.xlane.f32.xlu0 %v271_v16 }
  0x44   : > { %275 = vadd.xlane.f32.xlu1 %v274_v17  ;;  %p750_p2 = pnand %p749_p0, %p743_p13 }
  0x47   : > { %278 = vadd.xlane.f32.xlu0 %v277_v22 }
  0x48   : > { %281 = vadd.xlane.f32.xlu1 %v280_v23 }
  0xc8   : > { %v261_v24 = vpop.xlane.xlu0 %260 }
  0xc9   : > { %v283_v25 = vmul.f32 0.00390625, %v261_v24  ;;  %v267_v26 = vpop.xlane.xlu1 %266 }
  0xca   : > { %v285_v28 = vmul.f32 0.00390625, %v267_v26  ;;  %v342_v26 = vlaneseq }
  0xcb   : > { %v299_v32 = vmul.f32 %v291_v27, %v283_v25 }
  0xcc   : > { %v264_v31 = vpop.xlane.xlu0 %263  ;;  %v301_v37 = vmul.f32 %v293_v29, %v285_v28  ;;  %v329_v29 = vld [vmem:[%s1187_s2] sm:$0x1] }
  0xcd   : > { %v284_v33 = vmul.f32 0.00390625, %v264_v31  ;;  %v270_v35 = vpop.xlane.xlu1 %269  ;;  %v308_v42 = vsel %vm307_vm0, %v299_v32, 0.0 }
  0xce   : > { %v286_v36 = vmul.f32 0.00390625, %v270_v35  ;;  %v311_v49 = vsel %vm307_vm0, %v301_v37, 0.0  ;;  %v334_v37 = vld [vmem:[%s1188_s3] sm:$0xff] }
  0xcf   : > { %v300_v38 = vmul.f32 %v292_v30, %v284_v33  ;;  %v343_v30 = vshrl.u32 %v342_v26, 7 }
  0xd0   : > { %v302_v39 = vmul.f32 %v294_v34, %v286_v36  ;;  %v273_v41 = vpop.xlane.xlu0 %272  ;;  %v335_v36 = vld [vmem:[%s1188_s3 + $0x8] sm:$0xff] }
  0xd1   : > { %v309_v43 = vsel %vm307_vm0, %v300_v38, 0.0  ;;  %v287_v44 = vmul.f32 0.00390625, %v273_v41  ;;  %v276_v46 = vpop.xlane.xlu1 %275  ;;  %v344_v33 = vsub.s32 0, %v343_v30 }
  0xd2   : > { %v310_v47 = vadd.f32 %v309_v43, %v308_v42  ;;  %v288_v48 = vmul.f32 0.00390625, %v276_v46  ;;  %v313_v50 = vsel %vm307_vm0, %v302_v39, 0.0  ;;  %v337_v39 = vld [vmem:[%s1188_s3 + $0x18] sm:$0xff] }
  0xd3   : > { %v303_v51 = vmul.f32 %v295_v40, %v287_v44  ;;  %v336_v40 = vld [vmem:[%s1188_s3 + $0x10] sm:$0xff] }
  0xd4   : > { %v312_v52 = vadd.f32 %v311_v49, %v310_v47  ;;  %v304_v53 = vmul.f32 %v296_v45, %v288_v48  ;;  %v279_v55 = vpop.xlane.xlu0 %278  ;;  %v339_v47 = vld [vmem:[%s1188_s3 + $0x28] sm:$0xff]  ;;  %v338_v48 = vld [vmem:[%s1188_s3 + $0x20] sm:$0xff] }
  0xd5   : > { %v315_v56 = vsel %vm307_vm0, %v303_v51, 0.0  ;;  %v289_v57 = vmul.f32 0.00390625, %v279_v55  ;;  %v282_v59 = vpop.xlane.xlu1 %281 }
  0xd6   : > { %v314_v60 = vadd.f32 %v313_v50, %v312_v52  ;;  %v290_v61 = vmul.f32 0.00390625, %v282_v59  ;;  %v317_v62 = vsel %vm307_vm0, %v304_v53, 0.0  ;;  %v341_v53 = vld [vmem:[%s1188_s3 + $0x38] sm:$0xff] }
  0xd7   : > { %v305_v63 = vmul.f32 %v297_v54, %v289_v57  ;;  %v340_v54 = vld [vmem:[%s1188_s3 + $0x30] sm:$0xff] }
  0xd8   : > { %v316_v3 = vadd.f32 %v315_v56, %v314_v60  ;;  %v306_v7 = vmul.f32 %v298_v58, %v290_v61  ;;  %v811_v61 = vmov 0  }
  0xd9   : > { %v319_v10 = vsel %vm307_vm0, %v305_v63, 0.0  ;;  %677 = vset.pattern.permute.xlu1 %v811_v61  ;;  %676 = vset.pattern.permute.xlu0 %v811_v61  ;;  %v378_v63 = vld [vmem:[%s1189_s4] sm:$0xff] }
  0xda   : > { %v318_v11 = vadd.f32 %v317_v62, %v316_v3  ;;  %v321_v16 = vsel %vm307_vm0, %v306_v7, 0.0  ;;  %v379_v62 = vld [vmem:[%s1189_s4 + $0x8] sm:$0xff] }
  0xdc   : > { %v320_v17 = vadd.f32 %v319_v10, %v318_v11 }
  0xde   : > { %v322_v22 = vadd.f32 %v321_v16, %v320_v17  ;;  %v381_v16 = vld [vmem:[%s1189_s4 + $0x18] sm:$0xff]  ;;  %v380_v17 = vld [vmem:[%s1189_s4 + $0x10] sm:$0xff] }
  0xe0   : > { %v323_v23 = vrot.slane %v322_v22, 4 }
  0xe2   : > { %v324_v24 = vadd.f32 %v323_v23, %v322_v22 }
  0xe4   : > { %v325_v25 = vrot.slane %v324_v24, 2 }
  0xe6   : > { %v326_v27 = vadd.f32 %v325_v25, %v324_v24 }
  0xe8   : > { %v327_v28 = vrot.slane %v326_v27, 1 }
  0xea   : > { %v328_v31 = vadd.f32 %v327_v28, %v326_v27  ;;  %v383_v28 = vld [vmem:[%s1189_s4 + $0x28] sm:$0xff] }
  0xec   : > { %v330_v32 = vadd.f32 %v329_v29, %v328_v31  ;;  %v382_v29 = vld [vmem:[%s1189_s4 + $0x20] sm:$0xff] }
  0xee   : > { %vm331_vm1 = vcmp.ge.f32.partialorder %v330_v32, 0.0  ;;  %v332_v34 = vmul.f32 0.2, %v330_v32 }
  0xf0   : > { %v333_v35 = vsel %vm331_vm1, %v330_v32, %v332_v34 }
  0xf1   : > { %v345_v38 = vrot.slane %v333_v35, %v344_v33 }
  0xf3   : > { %v347_v41 = vmul.f32 %v345_v38, %v335_v36  ;;  %v346_v42 = vmul.f32 %v345_v38, %v334_v37  ;;  %v349_v45 = vmul.f32 %v345_v38, %v337_v39  ;;  %v348_v46 = vmul.f32 %v345_v38, %v336_v40  ;;  %v384_v37 = vld [vmem:[%s1189_s4 + $0x30] sm:$0xff] }
  0xf4   : > { %v351_v51 = vmul.f32 %v345_v38, %v339_v47  ;;  %v350_v52 = vmul.f32 %v345_v38, %v338_v48  ;;  %v353_v57 = vmul.f32 %v345_v38, %v341_v53  ;;  %v352_v58 = vmul.f32 %v345_v38, %v340_v54 }
  0xf5   : > { %v357_v43 = vsel %vm307_vm0, %v347_v41, 0.0  ;;  %v354_v44 = vsel %vm307_vm0, %v346_v42, 0.0  ;;  %v363_v49 = vsel %vm307_vm0, %v349_v45, 0.0  ;;  %v360_v50 = vsel %vm307_vm0, %v348_v46, 0.0  ;;  %v385_v42 = vld [vmem:[%s1189_s4 + $0x38] sm:$0xff] }
  0xf6   : > { %358 = vadd.xlane.f32.xlu1 %v357_v43  ;;  %355 = vadd.xlane.f32.xlu0 %v354_v44  ;;  %v369_v55 = vsel %vm307_vm0, %v351_v51, 0.0  ;;  %v366_v56 = vsel %vm307_vm0, %v350_v52, 0.0  ;;  %v375_v59 = vsel %vm307_vm0, %v353_v57, 0.0  ;;  %v372_v60 = vsel %vm307_vm0, %v352_v58, 0.0 }
  0xfa   : > { %364 = vadd.xlane.f32.xlu1 %v363_v49  ;;  %361 = vadd.xlane.f32.xlu0 %v360_v50 }
  0xfe   : > { %370 = vadd.xlane.f32.xlu1 %v369_v55  ;;  %367 = vadd.xlane.f32.xlu0 %v366_v56 }
 0x102   : > { %376 = vadd.xlane.f32.xlu1 %v375_v59  ;;  %373 = vadd.xlane.f32.xlu0 %v372_v60 }
 0x183   : > { %v359_v3 = vpop.xlane.xlu1 %358  ;;  %v356_v7 = vpop.xlane.xlu0 %355 }
 0x184   : > { %v387_v10 = vadd.f32 %v379_v62, %v359_v3  ;;  %v386_v11 = vadd.f32 %v378_v63, %v356_v7 }
 0x186   : > { %v611_v22 = vmul.f32 -1.442695, %v387_v10  ;;  %v610_v23 = vmul.f32 -1.442695, %v386_v11 }
 0x187   : > { %v365_v24 = vpop.xlane.xlu1 %364  ;;  %v362_v25 = vpop.xlane.xlu0 %361 }
 0x188   : > { %678 = vpow2.f32 %v611_v22  ;;  %v389_v26 = vadd.f32 %v381_v16, %v365_v24  ;;  %v388_v27 = vadd.f32 %v380_v17, %v362_v25 }
 0x189   : > { %680 = vpow2.f32 %v610_v23 }
 0x18a   : > { %v613_v30 = vmul.f32 -1.442695, %v389_v26  ;;  %v612_v31 = vmul.f32 -1.442695, %v388_v27 }
 0x18b   : > { %v371_v32 = vpop.xlane.xlu1 %370  ;;  %v368_v33 = vpop.xlane.xlu0 %367 }
 0x18c   : > { %682 = vpow2.f32 %v613_v30  ;;  %v391_v34 = vadd.f32 %v383_v28, %v371_v32  ;;  %v390_v35 = vadd.f32 %v382_v29, %v368_v33 }
 0x18d   : > { %684 = vpow2.f32 %v612_v31 }
 0x18e   : > { %v614_v36 = vmul.f32 -1.442695, %v390_v35  ;;  %v615_v39 = vmul.f32 -1.442695, %v391_v34 }
 0x18f   : > { %v374_v38 = vpop.xlane.xlu0 %373  ;;  %v377_v43 = vpop.xlane.xlu1 %376 }
 0x190   : > { %686 = vpow2.f32 %v614_v36  ;;  %v392_v40 = vadd.f32 %v384_v37, %v374_v38  ;;  %v393_v47 = vadd.f32 %v385_v42, %v377_v43 }
 0x191   : > { %688 = vpow2.f32 %v615_v39 }
 0x192   : > { %v679_v41 = vpop.eup %678  ;;  %v616_v48 = vmul.f32 -1.442695, %v392_v40  ;;  %v617_v52 = vmul.f32 -1.442695, %v393_v47 }
 0x193   : > { %v681_v44 = vpop.eup %680  ;;  %v419_v45 = vadd.f32 1.0, %v679_v41 }
 0x194   : > { %v418_v46 = vadd.f32 1.0, %v681_v44 }
 0x195   : > { %690 = vrcp.f32 %v419_v45 }
 0x196   : > { %v683_v49 = vpop.eup %682  ;;  %692 = vrcp.f32 %v418_v46 }
 0x197   : > { %v685_v50 = vpop.eup %684  ;;  %694 = vpow2.f32 %v616_v48  ;;  %v421_v53 = vadd.f32 1.0, %v683_v49 }
 0x198   : > { %v420_v51 = vadd.f32 1.0, %v685_v50 }
 0x19a   : > { %696 = vrcp.f32 %v420_v51  ;;  %v687_v54 = vpop.eup %686 }
 0x19b   : > { %698 = vpow2.f32 %v617_v52  ;;  %v689_v55 = vpop.eup %688  ;;  %v422_v56 = vadd.f32 1.0, %v687_v54 }
 0x19c   : > { %700 = vrcp.f32 %v421_v53  ;;  %v423_v59 = vadd.f32 1.0, %v689_v55 }
 0x19d   : > { %702 = vrcp.f32 %v422_v56 }
 0x19e   : > { %704 = vrcp.f32 %v423_v59 }
 0x19f   : > { %v691_v57 = vpop.eup %690 }
 0x1a0   : > { %v693_v58 = vpop.eup %692  ;;  %449 = vperm.xlu1 %677, %v691_v57  }
 0x1a1   : > { %444 = vperm.xlu0 %676, %v693_v58   ;;  %v695_v60 = vpop.eup %694 }
 0x1a2   : > { %v424_v62 = vadd.f32 1.0, %v695_v60 }
 0x1a4   : > { %v697_v61 = vpop.eup %696  ;;  %706 = vrcp.f32 %v424_v62 }
 0x1a5   : > { %454 = vperm.xlu1 %677, %v697_v61   ;;  %v699_v63 = vpop.eup %698 }
 0x1a6   : > { %v701_v3 = vpop.eup %700  ;;  %v425_v7 = vadd.f32 1.0, %v699_v63 }
 0x1a7   : > { %v703_v10 = vpop.eup %702 }
 0x1a8   : > { %708 = vrcp.f32 %v425_v7  ;;  %v705_v11 = vpop.eup %704 }
 0x1a9   : > { %459 = vperm.xlu1 %677, %v701_v3  }
 0x1ad   : > { %464 = vperm.xlu1 %677, %v703_v10  }
 0x1ae   : > { %v707_v16 = vpop.eup %706 }
 0x1b1   : > { %469 = vperm.xlu1 %677, %v705_v11  }
 0x1b2   : > { %v709_v17 = vpop.eup %708 }
 0x1b5   : > { %474 = vperm.xlu1 %677, %v707_v16  }
 0x1b9   : > { %479 = vperm.xlu1 %677, %v709_v17  }
 0x21f   : > { %v450_v22 = vpop.permute.xlu1 %449 }
 0x220   : > { %v484_v23 = vmul.f32 %v450_v22, %v969_v5  ;;  %v485_v24 = vmul.f32 %v450_v22, %v971_v6  ;;  %v445_v25 = vpop.permute.xlu0 %444 }
 0x221   : > { %v482_v26 = vmul.f32 %v445_v25, %v959_v0  ;;  %v483_v27 = vmul.f32 %v445_v25, %v961_v1 }
 0x222   : > { %500 = vst [vmem:[%s1104_s10 + $0x10] sm:$0xff] %v484_v23  ;;  %501 = vst [vmem:[%s1104_s10 + $0x18] sm:$0xff] %v485_v24 }
 0x223   : > { %498 = vst [vmem:[%s1104_s10] sm:$0xff] %v482_v26  ;;  %499 = vst [vmem:[%s1104_s10 + $0x8] sm:$0xff] %v483_v27 }
 0x224   : > { %v455_v0 = vpop.permute.xlu1 %454 }
 0x225   : > { %v486_v1 = vmul.f32 %v455_v0, %v963_v2  ;;  %v487_v5 = vmul.f32 %v455_v0, %v967_v4 }
 0x227   : > { %502 = vst [vmem:[%s1104_s10 + $0x20] sm:$0xff] %v486_v1  ;;  %503 = vst [vmem:[%s1104_s10 + $0x28] sm:$0xff] %v487_v5 }
 0x228   : > { %v460_v6 = vpop.permute.xlu1 %459 }
 0x229   : > { %v488_v28 = vmul.f32 %v460_v6, %v975_v8  ;;  %v489_v29 = vmul.f32 %v460_v6, %v977_v9 }
 0x22b   : > { %504 = vst [vmem:[%s1104_s10 + $0x30] sm:$0xff] %v488_v28  ;;  %505 = vst [vmem:[%s1104_s10 + $0x38] sm:$0xff] %v489_v29 }
 0x22c   : > { %v465_v30 = vpop.permute.xlu1 %464 }
 0x22d   : > { %v490_v2 = vmul.f32 %v465_v30, %v983_v12  ;;  %v491_v4 = vmul.f32 %v465_v30, %v985_v13 }
 0x22f   : > { %506 = vst [vmem:[%s1104_s10 + $0x40] sm:$0xff] %v490_v2  ;;  %507 = vst [vmem:[%s1104_s10 + $0x48] sm:$0xff] %v491_v4 }
 0x230   : > { %v470_v31 = vpop.permute.xlu1 %469 }
 0x231   : > { %v492_v32 = vmul.f32 %v470_v31, %v987_v14  ;;  %v493_v8 = vmul.f32 %v470_v31, %v989_v15 }
 0x233   : > { %508 = vst [vmem:[%s1104_s10 + $0x50] sm:$0xff] %v492_v32  ;;  %509 = vst [vmem:[%s1104_s10 + $0x58] sm:$0xff] %v493_v8 }
 0x234   : > { %v475_v9 = vpop.permute.xlu1 %474 }
 0x235   : > { %v494_v33 = vmul.f32 %v475_v9, %v995_v18  ;;  %v495_v12 = vmul.f32 %v475_v9, %v997_v19 }
 0x237   : > { %510 = vst [vmem:[%s1104_s10 + $0x60] sm:$0xff] %v494_v33  ;;  %511 = vst [vmem:[%s1104_s10 + $0x68] sm:$0xff] %v495_v12 }
 0x238   : > { %v480_v13 = vpop.permute.xlu1 %479 }
 0x239   : > { %v496_v14 = vmul.f32 %v480_v13, %v999_v20  ;;  %v497_v15 = vmul.f32 %v480_v13, %v1001_v21 }
 0x23b   : > { %512 = vst [vmem:[%s1104_s10 + $0x70] sm:$0xff] %v496_v14  ;;  %513 = vst [vmem:[%s1104_s10 + $0x78] sm:$0xff] %v497_v15 }
 0x23c   : > { %753 = shalt.err (!%p750_p2)
}
 0x23d   : > { %s754_s15 = scalar_lea.hbm %s1135_s26, 2048  ;;  %s758_s7 = scalar_lea.hbm %s1190_s5, 4096 }
 0x23e   : > { %p755_p4 = scmp.ne.s32.totalorder %s1135_s26, %s754_s15  ;;  %p759_p9 = scmp.lt.u32.totalorder %s1135_s26, %s1190_s5 }
 0x23f   : > { %p760_p1 = scmp.lt.u32.totalorder %s758_s7, %s754_s15  ;;  %p762_p6 = scmp.lt.u32.totalorder %s754_s15, %s1135_s26 }
 0x240   : > { %p756_p5 = pnand %p755_p4, %p1197_p11 }
 0x241   : > { %p761_p3 = por %p760_p1, %p759_p9 }
 0x242   : > { %p757_p7 = pneg %p756_p5 }
 0x243   : > { %p763_p12 = por %p762_p6, %p761_p3 }
 0x245   : > { %p764_p13 = pnand %p763_p12, %p757_p7 }
 0x247   : > { %767 = shalt.err (!%p764_p13)
}
 0x248   : > { %s813_s25 = smov 256   ;;  %s814_s13 = smov 16  }
 0x249   : > { %627 = dma.vmem_to_hbm [thread:$0]  (%p1197_p11), %s1137_s11, 2048, %s1135_s26, %s515_s22, %s813_s25, %s813_s25, %s814_s13  }
 0x24a PF: > { %s543_s17 = sand.u32 1, %s794_s18   ;;  %p1198_p8 = scmp.ne.s32.totalorder %s1195_s6, 0 }
 0x24b   : > { %p1199_p10 = scmp.ge.s32.totalorder %s806_s21, 2  ;;  %s544_s28 = scalar_lea.sflag [#allocation4], %s543_s17 }
 0x24d   : > { %p634_p0 = pnand %p1199_p10, %p1198_p8 }
 0x24f   : > { %789 = dma.done.wait (!%p634_p0), %s544_s28, 2048  }
 0x250   : > { %791 = vsyncadd (!%p634_p0), %s544_s28, 4294965248  ;;  %p18_p2 = scmp.ge.s32.totalorder %s870_s24, 4   ;;  %s1200_s18 = smov %s798_s19 }
 0x251   : > { %s1201_s19 = smov %s802_s20  ;;  %s1202_s20 = smov %s882_s27 }
 0x252   : > { %s1203_s21 = smov %s870_s24  ;;  %20 = sbr.rel (!%p18_p2) target bundleno = 5 (0x5), region = 85 }
 0x259   :  { %549 = vsyncpa [#allocation3], 1 }
 0x25a   :  { %551 = vsyncpa [#allocation3 + $0x1], 1 }
 0x25b   :  { %552 = vsyncpa [#allocation4], 1 }
 0x25c   :  { %554 = vsyncpa [#allocation4 + $0x1], 1 }

</bundles_post_ra>
